<compile_context>
chip_gen: v6e
topology: v6e:2x2x1
jax: 0.10.0
libtpu: 0.0.40
codegen_flags: <defaults>
</compile_context>

<pallas_src>
import math

import jax
import jax.numpy as jnp
from jax.experimental import pallas as pl
from jax.experimental.pallas import tpu as pltpu


_TWO_PI = 2.0 * math.pi


def _gfft_kernel(x_ref, b_ref, o_ref):
    # x_ref : (tm, c)     current row tile of the flattened input (f32)
    # b_ref : (c, m)      full projection matrix with 2*pi already folded in (f32)
    # o_ref : (tm, 2*m)   output tile; [:, :m] = sin, [:, m:] = cos
    m = b_ref.shape[1]
    # Keep the angle in f32 regardless of output dtype: with scale=10 the
    # angle is O(100) rad and bf16 range reduction would be badly wrong.
    y = jnp.dot(x_ref[...], b_ref[...], preferred_element_type=jnp.float32)
    o_ref[:, :m] = jnp.sin(y).astype(o_ref.dtype)
    o_ref[:, m:] = jnp.cos(y).astype(o_ref.dtype)


def _round_up(v: int, mult: int) -> int:
    return ((v + mult - 1) // mult) * mult


def _vmem_limit_bytes() -> int:
    """Generation-aware scoped-VMEM limit (~70% of physical capacity)."""
    try:
        cap = int(pltpu.get_tpu_info().vmem_capacity_bytes)
    except Exception:
        cap = 64 * 1024 * 1024  # conservative fallback: v7x per-TC physical VMEM
    return max(int(0.7 * cap), 16 * 1024 * 1024)


def _choose_tiling(rows: int, c: int, m: int, out_bytes: int,
                   sublane: int, vmem_limit: int):
    """Pick (tm, grid, rows_pad) balancing grid steps and VMEM footprint."""
    # Per-row footprint: double-buffered x tile + double-buffered output tile
    # + the f32 (tm, m) matmul intermediate (with slack for sin/cos temps).
    per_row = 2 * c * 4 + 2 * (2 * m) * out_bytes + 2 * m * 4
    resident = 2 * c * m * 4  # (double-buffered) B, usually tiny
    budget = max(vmem_limit - resident - (2 << 20), per_row * sublane)
    tm_max = max(sublane, min((budget // per_row) // sublane * sublane, 2048))
    # Balance: enough steps to shard across v7x's 2 TCs (>=4 when rows allow),
    # and size the tile to the grid so row padding is < 1 sublane per tile.
    g = max(pl.cdiv(rows, tm_max), min(4, pl.cdiv(rows, sublane)))
    tm = _round_up(pl.cdiv(rows, g), sublane)
    rows_pad = g * tm
    return tm, g, rows_pad


def gaussian_fourier_feature_transform(x, B, *, out_dtype=jnp.float32):
    """x: (b, n, c) float, B: (c, m) float -> (b, n, 2*m) out_dtype."""
    b, n, c = x.shape
    c_b, m = B.shape
    assert c == c_b, "B must have shape (num_input_channels, mapping_size)"
    rows = b * n

    # Fold 2*pi into B on the host (B is only (c, m), so this is ~free and is
    # NOT the "pre-scale the big input" anti-pattern).
    B_scaled = (_TWO_PI * B).astype(jnp.float32)
    x_flat = x.reshape(rows, c).astype(jnp.float32)

    out_bytes = jnp.dtype(out_dtype).itemsize
    sublane = 16 if out_bytes == 2 else 8
    vmem_limit = _vmem_limit_bytes()
    tm, g, rows_pad = _choose_tiling(rows, c, m, out_bytes, sublane, vmem_limit)
    if rows_pad != rows:
        x_flat = jnp.pad(x_flat, ((0, rows_pad - rows), (0, 0)))

    # EUP / output-writeback bound, not MXU bound (K = c is tiny).
    cost = pl.CostEstimate(
        flops=2 * rows_pad * c * m,
        transcendentals=2 * rows_pad * m,
        bytes_accessed=(rows_pad * c + c * m) * 4 + rows_pad * 2 * m * out_bytes,
    )

    out_flat = pl.pallas_call(
        _gfft_kernel,
        out_shape=jax.ShapeDtypeStruct((rows_pad, 2 * m), out_dtype),
        grid_spec=pltpu.PrefetchScalarGridSpec(
            num_scalar_prefetch=0,
            grid=(g,),
            in_specs=[
                pl.BlockSpec((tm, c), lambda i: (i, 0)),    # row tile of x
                pl.BlockSpec((c, m), lambda i: (0, 0)),     # full (scaled) B
            ],
            # Exact-width output: last block dim == full array dim (2*m), so no
            # lane padding and no host-side slice+concat epilogue is needed.
            out_specs=pl.BlockSpec((tm, 2 * m), lambda i: (i, 0)),
        ),
        compiler_params=pltpu.CompilerParams(
            dimension_semantics=("parallel",),   # shards across v7x's 2 TCs
            vmem_limit_bytes=vmem_limit,
        ),
        cost_estimate=cost,
    )(x_flat, B_scaled)

    return out_flat[:rows].reshape(b, n, 2 * m)


if __name__ == "__main__":
    # Shapes consistent with the module's forward:
    # x: (batch=2, seq=8, num_input_channels=4), mapping_size=256, scale=10
    batch, seq, num_input_channels = 2, 8, 4
    mapping_size, scale = 256, 10.0

    key = jax.random.PRNGKey(0)
    kx, kb = jax.random.split(key)
    x = jax.random.normal(kx, (batch, seq, num_input_channels), dtype=jnp.float32)
    # Deterministic stand-in for torch.randn((c, m)) * scale
    B = jax.random.normal(kb, (num_input_channels, mapping_size),
                          dtype=jnp.float32) * scale

    out = jax.block_until_ready(gaussian_fourier_feature_transform(x, B))

    # Pure-JAX reference (full-precision matmul on the host side).
    y_ref = _TWO_PI * jnp.dot(x.reshape(-1, num_input_channels), B,
                              precision=jax.lax.Precision.HIGHEST)
    ref = jnp.concatenate([jnp.sin(y_ref), jnp.cos(y_ref)], axis=-1).reshape(
        batch, seq, 2 * mapping_size)
    assert out.shape == (batch, seq, 2 * mapping_size)
    assert jnp.allclose(out, ref, atol=1e-3, rtol=1e-3)

    # mapping_size not a multiple of 128 and rows not a tile multiple:
    # exercises the exact-width output path (masked cos-half store).
    m2 = 100
    x2 = jax.random.normal(kx, (3, 5, num_input_channels), dtype=jnp.float32)
    B2 = jax.random.normal(kb, (num_input_channels, m2), dtype=jnp.float32) * scale
    out2 = jax.block_until_ready(gaussian_fourier_feature_transform(x2, B2))
    y2 = _TWO_PI * jnp.dot(x2.reshape(-1, num_input_channels), B2,
                           precision=jax.lax.Precision.HIGHEST)
    ref2 = jnp.concatenate([jnp.sin(y2), jnp.cos(y2)], axis=-1).reshape(3, 5, 2 * m2)
    assert out2.shape == (3, 5, 2 * m2)
    assert jnp.allclose(out2, ref2, atol=1e-3, rtol=1e-3)

    # Optional bf16-output path (halves the dominant writeback on v5e/v6e);
    # angle and sin/cos stay in f32, only the stores are cast.
    out_bf16 = jax.block_until_ready(
        gaussian_fourier_feature_transform(x, B, out_dtype=jnp.bfloat16))
    assert out_bf16.dtype == jnp.bfloat16
    assert out_bf16.shape == (batch, seq, 2 * mapping_size)
    assert jnp.allclose(out_bf16.astype(jnp.float32), ref, atol=2e-2, rtol=0)

    print("KERNEL_OK")
</pallas_src>

<mosaic_0001>
module attributes {stable_mosaic.version = 11 : i64} {
  func.func @_gfft_kernel(%arg0: i32, %arg1: memref<8x4xf32, #tpu.memory_space<vmem>>, %arg2: memref<4x256xf32, #tpu.memory_space<vmem>>, %arg3: memref<8x512xf32, #tpu.memory_space<vmem>>) attributes {dimension_semantics = [#tpu.dimension_semantics<parallel>], iteration_bounds = array<i64: 2>, scalar_prefetch = 0 : i64, scratch_operands = 0 : i64, tpu.core_type = #tpu.core_type<tc>, window_params = [{transform_indices = @transform_0, window_bounds = array<i64: 8, 4>}, {pipeline_mode = #tpu.pipeline_mode<synchronous>, transform_indices = @transform_1, window_bounds = array<i64: 4, 256>}, {transform_indices = @transform_2, window_bounds = array<i64: 8, 512>}]} {
    %c0 = arith.constant 0 : index
    %c0_0 = arith.constant 0 : index
    %0 = vector.load %arg1[%c0, %c0_0] : memref<8x4xf32, #tpu.memory_space<vmem>>, vector<8x4xf32>
    %c0_1 = arith.constant 0 : index
    %c0_2 = arith.constant 0 : index
    %1 = vector.load %arg2[%c0_1, %c0_2] : memref<4x256xf32, #tpu.memory_space<vmem>>, vector<4x256xf32>
    %cst = arith.constant dense<0.000000e+00> : vector<8x256xf32>
    %2 = tpu.matmul %0, %1, %cst {dimension_numbers = #tpu.dot_dimension_numbers<[1], [0], [0], [1], [0, 0, 1, 1], [], []>} : vector<8x4xf32>, vector<4x256xf32>, vector<8x256xf32> -> vector<8x256xf32>
    %3 = math.sin %2 : vector<8x256xf32>
    %c0_3 = arith.constant 0 : index
    %c0_4 = arith.constant 0 : index
    %4 = vector.load %arg3[%c0_3, %c0_4] : memref<8x512xf32, #tpu.memory_space<vmem>>, vector<8x256xf32>
    tpu.vector_store %arg3[%c0_3, %c0_4], %3 {strides = array<i32>} : memref<8x512xf32, #tpu.memory_space<vmem>>, vector<8x256xf32>,
    %5 = math.cos %2 : vector<8x256xf32>
    %c0_5 = arith.constant 0 : index
    %c256 = arith.constant 256 : index
    %6 = vector.load %arg3[%c0_5, %c256] : memref<8x512xf32, #tpu.memory_space<vmem>>, vector<8x256xf32>
    tpu.vector_store %arg3[%c0_5, %c256], %5 {strides = array<i32>} : memref<8x512xf32, #tpu.memory_space<vmem>>, vector<8x256xf32>,
    return
  }
  func.func @transform_0(%arg0: i32) -> (i32, i32) {
    %c0_i32 = arith.constant 0 : i32
    %c0_i32_0 = arith.constant 0 : i32
    return %arg0, %c0_i32 : i32, i32
  }
  func.func @transform_1(%arg0: i32) -> (i32, i32) {
    %c0_i32 = arith.constant 0 : i32
    %c0_i32_0 = arith.constant 0 : i32
    %c0_i32_1 = arith.constant 0 : i32
    return %c0_i32, %c0_i32_0 : i32, i32
  }
  func.func @transform_2(%arg0: i32) -> (i32, i32) {
    %c0_i32 = arith.constant 0 : i32
    %c0_i32_0 = arith.constant 0 : i32
    return %arg0, %c0_i32 : i32, i32
  }
}

</mosaic_0001>

<bundles_post_ra>
// kernel: tpu_custom_call.1
= control target key start
LH: loop header
LB: loop body
LE: loop exit
PB: predicated region body
PF: predicated region fallthrough
CT: control target
= control target key end

     0   :  { %7 = vsyncpa [#allocation3], 0  ;;  %s1069_s0 = inlined_call_operand.vmem [shape: f32[16,4], index: 0, kind: input, shape index: {}]   ;;  %s1070_s1 = inlined_call_operand.vmem [shape: f32[4,256], index: 1, kind: input, shape index: {}]   ;;  %s1071_s2 = inlined_call_operand.hbm [shape: f32[16,512], index: 2, kind: output, shape index: {}]  }
   0x1   :  { %9 = vsyncpa [#allocation3 + $0x1], 0  ;;  %s894_s9 = smov 0   ;;  %s896_s10 = smov 0  }
   0x2   :  { %s898_s11 = smov 0   ;;  %s900_s12 = smov 0  }
   0x3 LB: > { %s915_s13 = sadd.s32 4294967295, %s869_s12   ;;  %s715_s14 = sadd.s32 4294967294, %s869_s12   ;;  %s869_s12 = sphi %s900_s12, %s1079_s12   ;;  %s865_s11 = sphi %s898_s11, %s1078_s11   ;;  %s861_s10 = sphi %s896_s10, %s1077_s10   ;;  %s857_s9 = sphi %s894_s9, %s1076_s9  }
   0x4   : > { %s919_s15 = sadd.s32 1, %s869_s12   ;;  %s69_s16 = sadd.s32 1, %s865_s11 }
   0x5   : > { %s66_s17 = ssub.s32 %s869_s12, %s919_s15  ;;  %p79_p0 = scmp.ne.s32.totalorder %s865_s11, %s861_s10 }
   0x6   : > { %p67_p1 = scmp.eq.s32.totalorder %s66_s17, 0  ;;  %p80_p2 = scmp.eq.s32.totalorder %s915_s13, 1 }
   0x7   : > { %p85_p3 = scmp.ne.s32.totalorder %s861_s10, %s857_s9  ;;  %p86_p4 = scmp.eq.s32.totalorder %s715_s14, 1 }
   0x8   : > { %s930_s18 = scalar_select %p67_p1, %s865_s11, %s69_s16  }
   0x9   : > { %p932_p5 = por %p80_p2, %p79_p0  ;;  %p936_p6 = por %p86_p4, %p85_p3 }
   0xa   : > { %p718_p7 = scmp.ge.s32.totalorder %s869_s12, 1  ;;  %p114_p8 = scmp.lt.s32.totalorder %s869_s12, 3 }
   0xc   : > { %p115_p9 = pnand %p718_p7, %p114_p8 }
   0xd   : > { %p135_p10 = scmp.lt.s32.totalorder (!%p115_p9), %s915_s13, 1  ;;  %s132_s28 = sand.u32 (!%p115_p9), 1, %s861_s10  }
   0xe   : > { %118 = sbr.rel (%p115_p9) target bundleno = 322 (0x142), region = 28  ;;  %s719_s29 = sshll.u32 (!%p115_p9), %s132_s28, 5 }
   0xf   : > { %s134_s30 = scalar_lea.vmem (!%p115_p9), [#allocation2], %s719_s29  ;;  %s745_s3 = sshll.u32 (!%p115_p9), %s915_s13, 9 }
  0x10   : > { %s656_s4 = sshll.u32 (!%p115_p9), %s134_s30, 4  ;;  %s1026_s7 = scalar_lea.hbm (!%p115_p9), %s1071_s2, %s745_s3  ;;  %s1028_s4 = int_to_ptr.vmem [resolvable:$true] %s656_s4 }
  0x11   : > { %s642_s8 = scalar_lea.sflag (!%p115_p9), [#allocation3], %s132_s28  ;;  %s878_s14 = smov (!%p115_p9), [#allocation2]  }
  0x12   : > { %s813_s16 = sshll.u32 (!%p115_p9), %s878_s14, 4  ;;  %s814_s16 = int_to_ptr.vmem [resolvable:$false] %s813_s16 }
  0x13   : > { %v140_v0 = vld [vmem:[%s1070_s1] sm:$0xff]  ;;  %vm147_vm0 = vcmask 1043456   ;;  %v871_v2 = vmov 0.0   ;;  %s136_s23 = scalar_select %p135_p10, %s915_s13, 1  ;;  %vm143_vm1 = vcmask 31744  }
  0x14   : > { %v142_v1 = vcombine.high %v140_v0, %v140_v0  ;;  %216 = vmatprep.mubr.f32.mxu0 %v871_v2  ;;  %v872_v24 = vmov 683565275   ;;  %v873_v27 = vmov 2475754826   ;;  %v874_v29 = vmov 2131351028   ;;  %p816_p0 = scmp.lt.s32.totalorder %s1028_s4, %s814_s16 }
  0x15   : > { %s720_s24 = sshll.u32 %s136_s23, 3  ;;  %v875_v31 = vmov 2102212464   ;;  %v876_v33 = vmov 920167782   ;;  %s809_s13 = scalar_lea.vmem %s1028_s4, 512 }
  0x16   : > { %721 = vmatprep.subr.msk.mxu0 %vm147_vm0, %v142_v1  ;;  %s138_s27 = scalar_lea.vmem %s1069_s0, %s720_s24  ;;  %v877_v40 = vmov 1326507024   ;;  %p810_p11 = scmp.ne.s32.totalorder %s1028_s4, %s809_s13 }
  0x17   : > { %722 = vmatpush1.msk.msra.mxu0 %vm147_vm0, %v140_v0  ;;  %v139_v3 = vld [vmem:[%s138_s27] sm:$0xff]  ;;  %s815_s17 = scalar_lea.vmem %s814_s16, 1024 }
  0x18   : > { %723 = vmatmul.mubr.msk.f32.vlgmr.msra.gmra.mxu0 %vm143_vm1, %v139_v3  ;;  %p811_p12 = pnand %p810_p11, %p932_p5  ;;  %p817_p1 = scmp.lt.s32.totalorder %s815_s17, %s809_s13 }
  0x1a   : > { %p812_p13 = pneg %p811_p12  ;;  %p818_p2 = por %p817_p1, %p816_p0 }
  0x1c   : > { %p819_p3 = pnand %p818_p2, %p812_p13 }
  0xd8   : > { %v950_v4 = vpop.f32.mrf.mxu0 }
  0xd9   : > { %v223_v5 = vand.u32 2147483647, %v950_v4  ;;  %v226_v6 = vand.u32 2139095040, %v950_v4  ;;  %vm225_vm0 = vcmp.lt.s32.totalorder %v950_v4, 0 }
  0xda   : > { %v954_v7 = vpop.f32.mrf.mxu0 }
  0xdb   : > { %v227_v8 = vshrl.u32 %v226_v6, 23  ;;  %v230_v9 = vand.u32 8388607, %v223_v5  ;;  %v330_v10 = vand.u32 2139095040, %v954_v7  ;;  %v327_v12 = vand.u32 2147483647, %v954_v7 }
  0xdc   : > { %vm224_vm1 = vcmp.le.f32.partialorder %v223_v5, 0.7853982 }
  0xdd   : > { %v724_v11 = vadd.s32 4294967169, %v227_v8  ;;  %v331_v13 = vshrl.u32 %v330_v10, 23  ;;  %v231_v15 = vor.u32 8388608, %v230_v9  ;;  %v334_v17 = vand.u32 8388607, %v327_v12 }
  0xdf   : > { %v233_v14 = vadd.s32 1, %v724_v11  ;;  %v728_v16 = vadd.s32 4294967169, %v331_v13  ;;  %v962_v22 = vshll.u32 %v231_v15, 8  ;;  %v335_v26 = vor.u32 8388608, %v334_v17 }
  0xe1   : > { %vm234_vm2 = vcmp.gt.s32.totalorder %v233_v14, 0  ;;  %v337_v19 = vadd.s32 1, %v728_v16  ;;  %v375_v59 = vshll.u32 %v335_v26, 8 }
  0xe2   : > { %v235_v18 = vsel %vm234_vm2, %v233_v14, 0  ;;  %vm329_vm2 = vcmp.lt.s32.totalorder %v954_v7, 0 }
  0xe3   : > { %v236_v20 = vshrl.u32 %v235_v18, 5  ;;  %v237_v21 = vand.u32 31, %v235_v18  ;;  %vm338_vm3 = vcmp.gt.s32.totalorder %v337_v19, 0 }
  0xe4   : > { %v339_v45 = vsel %vm338_vm3, %v337_v19, 0  ;;  %vm1008_vm3 = vcmp.le.f32.partialorder %v327_v12, 0.7853982 }
  0xe5   : > { %v238_v23 = vsub.s32 32, %v237_v21  ;;  %v240_v25 = vshll.u32 %v872_v24, %v237_v21  ;;  %v243_v28 = vshll.u32 %v873_v27, %v237_v21  ;;  %v246_v30 = vshll.u32 %v874_v29, %v237_v21 }
  0xe6   : > { %v249_v32 = vshll.u32 %v875_v31, %v237_v21  ;;  %v252_v34 = vshll.u32 %v876_v33, %v237_v21  ;;  %vm255_vm4 = vcmp.lt.s32.totalorder %v236_v20, 1  ;;  %vm257_vm5 = vcmp.lt.s32.totalorder %v236_v20, 3 }
  0xe7   : > { %v241_v35 = vshrl.u32 %v873_v27, %v238_v23  ;;  %v244_v36 = vshrl.u32 %v874_v29, %v238_v23  ;;  %v247_v37 = vshrl.u32 %v875_v31, %v238_v23  ;;  %v239_v38 = vshrl.u32 %v872_v24, %v238_v23 }
  0xe8   : > { %v250_v39 = vshrl.u32 %v876_v33, %v238_v23  ;;  %v253_v41 = vshrl.u32 %v877_v40, %v238_v23  ;;  %vm258_vm6 = vcmp.lt.s32.totalorder %v236_v20, 4  ;;  %v341_v48 = vand.u32 31, %v339_v45 }
  0xe9   : > { %v242_v42 = vor.u32 %v241_v35, %v240_v25  ;;  %v245_v43 = vor.u32 %v244_v36, %v243_v28  ;;  %v248_v44 = vor.u32 %v247_v37, %v246_v30  ;;  %vm256_vm7 = vcmp.lt.s32.totalorder %v236_v20, 2 }
  0xea   : > { %v251_v46 = vor.u32 %v250_v39, %v249_v32  ;;  %v254_v47 = vor.u32 %v253_v41, %v252_v34  ;;  %v342_v56 = vsub.s32 32, %v341_v48  ;;  %v340_v63 = vshrl.u32 %v339_v45, 5 }
  0xeb   : > { %v259_v49 = vsel %vm255_vm4, %v239_v38, %v242_v42  ;;  %v260_v50 = vsel %vm258_vm6, %v248_v44, 2102212464  ;;  %v263_v51 = vsel %vm255_vm4, %v242_v42, %v245_v43  ;;  %v267_v52 = vsel %vm255_vm4, %v245_v43, %v248_v44 }
  0xec   : > { %v261_v53 = vsel %vm257_vm5, %v245_v43, %v260_v50  ;;  %v264_v54 = vsel %vm258_vm6, %v251_v46, 920167782  ;;  %v268_v55 = vsel %vm258_vm6, %v254_v47, 1326507024  ;;  %v344_v6 = vshll.u32 %v872_v24, %v341_v48 }
  0xed   : > { %v265_v57 = vsel %vm257_vm5, %v248_v44, %v264_v54  ;;  %v269_v58 = vsel %vm257_vm5, %v251_v46, %v268_v55  ;;  %v262_v60 = vsel %vm256_vm7, %v259_v49, %v261_v53  ;;  %v345_v8 = vshrl.u32 %v873_v27, %v342_v56 }
  0xee   : > { %v266_v61 = vsel %vm256_vm7, %v263_v51, %v265_v57  ;;  %v270_v62 = vsel %vm256_vm7, %v267_v52, %v269_v58  ;;  %v347_v9 = vshll.u32 %v873_v27, %v341_v48  ;;  %v348_v10 = vshrl.u32 %v874_v29, %v342_v56 }
  0xef   : > { %v974_v0 = vmul.u32.u64.low %v962_v22, %v270_v62  ;;  %v975_v1 = vmul.u32.u64.high %v962_v22, %v270_v62, %v974_v0  ;;  %v978_v2 = vmul.u32.u64.low %v962_v22, %v266_v61  ;;  %v979_v3 = vmul.u32.u64.high %v962_v22, %v266_v61, %v978_v2 }
  0xf0   : > { %v350_v11 = vshll.u32 %v874_v29, %v341_v48  ;;  %v351_v13 = vshrl.u32 %v875_v31, %v342_v56  ;;  %v353_v14 = vshll.u32 %v875_v31, %v341_v48  ;;  %v354_v15 = vshrl.u32 %v876_v33, %v342_v56 }
  0xf1   : > { %v346_v16 = vor.u32 %v345_v8, %v344_v6  ;;  %v349_v17 = vor.u32 %v348_v10, %v347_v9  ;;  %v356_v18 = vshll.u32 %v876_v33, %v341_v48  ;;  %v357_v19 = vshrl.u32 %v877_v40, %v342_v56 }
  0xf2   : > { %v278_v20 = vmul.u32 %v962_v22, %v262_v60  ;;  %vm280_vm8 = vc.u32 %v975_v1, %v978_v2  ;;  %v281_v21 = vadd.s32 1, %v979_v3  ;;  %v352_v23 = vor.u32 %v351_v13, %v350_v11 }
  0xf3   : > { %v343_v25 = vshrl.u32 %v872_v24, %v342_v56  ;;  %v355_v26 = vor.u32 %v354_v15, %v353_v14  ;;  %v358_v27 = vor.u32 %v357_v19, %v356_v18  ;;  %vm359_vm9 = vcmp.lt.s32.totalorder %v340_v63, 1 }
  0xf4   : > { %v282_v28 = vsel %vm280_vm8, %v281_v21, %v979_v3  ;;  %vm361_vm10 = vcmp.lt.s32.totalorder %v340_v63, 3  ;;  %vm362_vm11 = vcmp.lt.s32.totalorder %v340_v63, 4  ;;  %v367_v29 = vsel %vm359_vm9, %v346_v16, %v349_v17 }
  0xf5   : > { %v283_v30 = vadd.s32 %v282_v28, %v278_v20  ;;  %v364_v31 = vsel %vm362_vm11, %v352_v23, 2102212464  ;;  %v368_v32 = vsel %vm362_vm11, %v355_v26, 920167782  ;;  %v371_v22 = vsel %vm359_vm9, %v349_v17, %v352_v23 }
  0xf6   : > { %vm360_vm12 = vcmp.lt.s32.totalorder %v340_v63, 2  ;;  %v363_v33 = vsel %vm359_vm9, %v343_v25, %v346_v16  ;;  %v369_v34 = vsel %vm361_vm10, %v352_v23, %v368_v32  ;;  %v372_v35 = vsel %vm362_vm11, %v358_v27, 1326507024 }
  0xf7   : > { %v284_v36 = vadd.s32 536870912, %v283_v30  ;;  %v365_v37 = vsel %vm361_vm10, %v349_v17, %v364_v31  ;;  %v370_v38 = vsel %vm360_vm12, %v367_v29, %v369_v34  ;;  %v373_v24 = vsel %vm361_vm10, %v355_v26, %v372_v35 }
  0xf8   : > { %v374_v39 = vsel %vm360_vm12, %v371_v22, %v373_v24  ;;  %v989_v40 = vmul.u32.u64.low %v375_v59, %v370_v38  ;;  %v990_v41 = vmul.u32.u64.high %v375_v59, %v370_v38, %v989_v40  ;;  %v366_v45 = vsel %vm360_vm12, %v363_v33, %v365_v37 }
  0xf9   : > { %v285_v42 = vshrl.u32 %v284_v36, 30  ;;  %v992_v43 = vmul.u32.u64.low %v375_v59, %v374_v39  ;;  %v993_v44 = vmul.u32.u64.high %v375_v59, %v374_v39, %v992_v43  ;;  %v382_v49 = vmul.u32 %v375_v59, %v366_v45 }
  0xfa   : > { %v385_v47 = vadd.s32 1, %v990_v41  ;;  %v279_v62 = vadd.s32 %v978_v2, %v975_v1  ;;  %vm315_vm10 = vweird.f32 %v950_v4 }
  0xfb   : > { %v286_v46 = vshll.u32 %v285_v42, 30  ;;  %vm384_vm13 = vc.u32 %v993_v44, %v989_v40  ;;  %v383_v20 = vadd.s32 %v989_v40, %v993_v44  ;;  %v309_v23 = vsub.s32 4, %v285_v42 }
  0xfc   : > { %v386_v50 = vsel %vm384_vm13, %v385_v47, %v990_v41 }
  0xfd   : > { %v287_v48 = vsub.s32 %v283_v30, %v286_v46  ;;  %v387_v52 = vadd.s32 %v386_v50, %v382_v49  ;;  %v310_v32 = vsel %vm225_vm0, %v309_v23, %v285_v42 }
  0xfe   : > { %v312_v35 = vsel %vm224_vm1, 0, %v310_v32 }
  0xff   : > { %v289_v51 = vsub.s32 0, %v287_v48  ;;  %v388_v54 = vadd.s32 536870912, %v387_v52  ;;  %v316_v37 = vadd.s32 3, %v312_v35  ;;  %v526_v42 = vand.u32 3, %v312_v35 }
 0x101   : > { %v725_v53 = vmin.u32 %v289_v51, %v287_v48  ;;  %v389_v56 = vshrl.u32 %v388_v54, 30  ;;  %v317_v41 = vand.u32 3, %v316_v37  ;;  %vm531_vm5 = vcmp.eq.s32.totalorder %v526_v42, 2 }
 0x102   : > { %vm528_vm7 = vcmp.eq.s32.totalorder %v526_v42, 0  ;;  %vm527_vm9 = vcmp.lt.s32.totalorder %v526_v42, 2 }
 0x103   : > { %v291_v55 = vclz %v725_v53  ;;  %v390_v58 = vshll.u32 %v389_v56, 30  ;;  %v413_v5 = vsub.s32 4, %v389_v56  ;;  %vm322_vm4 = vcmp.eq.s32.totalorder %v317_v41, 2 }
 0x104   : > { %vm319_vm6 = vcmp.eq.s32.totalorder %v317_v41, 0  ;;  %vm318_vm8 = vcmp.lt.s32.totalorder %v317_v41, 2 }
 0x105   : > { %v726_v57 = vadd.s32 4294967294, %v291_v55  ;;  %v391_v61 = vsub.s32 %v387_v52, %v390_v58  ;;  %v414_v43 = vsel %vm329_vm2, %v413_v5, %v389_v56 }
 0x106   : > { %v416_v47 = vsel %vm1008_vm3, 0, %v414_v43 }
 0x107   : > { %vm727_vm14 = vcmp.lt.s32.totalorder %v726_v57, 0  ;;  %v393_v0 = vsub.s32 0, %v391_v61  ;;  %v420_v54 = vadd.s32 3, %v416_v47  ;;  %v629_v58 = vand.u32 3, %v416_v47 }
 0x108   : > { %v294_v60 = vsel %vm727_vm14, 0, %v726_v57 }
 0x109   : > { %v295_v63 = vsub.s32 32, %v294_v60  ;;  %v299_v59 = vsub.s32 4294967266, %v294_v60  ;;  %v296_v3 = vshll.u32 %v287_v48, %v294_v60  ;;  %v729_v9 = vmin.u32 %v393_v0, %v391_v61 }
 0x10a   : > { %v421_v57 = vand.u32 3, %v420_v54  ;;  %vm634_vm12 = vcmp.eq.s32.totalorder %v629_v58, 2  ;;  %vm631_vm14 = vcmp.eq.s32.totalorder %v629_v58, 0 }
 0x10b   : > { %v297_v6 = vshrl.u32 %v279_v62, %v295_v63  ;;  %v300_v8 = vadd.s32 127, %v299_v59  ;;  %v395_v13 = vclz %v729_v9 }
 0x10c   : > { %vm426_vm11 = vcmp.eq.s32.totalorder %v421_v57, 2  ;;  %vm423_vm13 = vcmp.eq.s32.totalorder %v421_v57, 0 }
 0x10d   : > { %v298_v10 = vor.u32 %v297_v6, %v296_v3  ;;  %v301_v11 = vshll.u32 %v300_v8, 23  ;;  %v730_v15 = vadd.s32 4294967294, %v395_v13 }
 0x10f   : > { %v302_v14 = vor.u32 4788187, %v301_v11  ;;  %v305_v17 = vcvt.s32.f32 %v298_v10  ;;  %vm731_vm15 = vcmp.lt.s32.totalorder %v730_v15, 0 }
 0x110   : > { %v398_v19 = vsel %vm731_vm15, 0, %v730_v15  ;;  %vm422_vm15 = vcmp.lt.s32.totalorder %v421_v57, 2 }
 0x111   : > { %v303_v16 = vand.u32 2147483647, %v302_v14  ;;  %v399_v1 = vsub.s32 32, %v398_v19  ;;  %v403_v2 = vsub.s32 4294967266, %v398_v19  ;;  %v400_v25 = vshll.u32 %v391_v61, %v398_v19 }
 0x113   : > { %v306_v18 = vmul.f32 %v305_v17, %v303_v16  ;;  %v401_v26 = vshrl.u32 %v383_v20, %v399_v1  ;;  %v404_v27 = vadd.s32 127, %v403_v2 }
 0x115   : > { %v307_v21 = vxor.u32 2147483648, %v306_v18  ;;  %v402_v30 = vor.u32 %v401_v26, %v400_v25  ;;  %v405_v31 = vshll.u32 %v404_v27, 23 }
 0x117   : > { %v308_v28 = vsel %vm225_vm0, %v307_v21, %v306_v18  ;;  %v406_v22 = vor.u32 4788187, %v405_v31  ;;  %v409_v34 = vcvt.s32.f32 %v402_v30  ;;  %vm630_vm0 = vcmp.lt.s32.totalorder %v629_v58, 2 }
 0x118   : > { %v311_v29 = vsel %vm224_vm1, %v950_v4, %v308_v28  ;;  %vm419_vm1 = vweird.f32 %v954_v7 }
 0x119   : > { %801 = vcosq.f32 %v311_v29  ;;  %v407_v33 = vand.u32 2147483647, %v406_v22 }
 0x11a   : > { %803 = vsinq.f32 %v311_v29 }
 0x11b   : > { %v410_v36 = vmul.f32 %v409_v34, %v407_v33 }
 0x11d   : > { %v411_v38 = vxor.u32 2147483648, %v410_v36 }
 0x11f   : > { %v412_v39 = vsel %vm329_vm2, %v411_v38, %v410_v36 }
 0x120   : > { %v415_v40 = vsel %vm1008_vm3, %v954_v7, %v412_v39 }
 0x121   : > { %805 = vcosq.f32 %v415_v40 }
 0x122   : > { %807 = vsinq.f32 %v415_v40 }
 0x126   : > { %v802_v44 = vpop.eup %801 }
 0x127   : > { %v804_v45 = vpop.eup %803  ;;  %v323_v46 = vxor.u32 2147483648, %v802_v44 }
 0x128   : > { %v320_v12 = vxor.u32 2147483648, %v804_v45 }
 0x129   : > { %v324_v48 = vsel %vm322_vm4, %v323_v46, %v804_v45  ;;  %v533_v49 = vsel %vm531_vm5, %v323_v46, %v804_v45 }
 0x12a   : > { %v321_v50 = vsel %vm319_vm6, %v802_v44, %v320_v12  ;;  %v530_v51 = vsel %vm528_vm7, %v802_v44, %v320_v12 }
 0x12b   : > { %v325_v52 = vsel %vm318_vm8, %v321_v50, %v324_v48  ;;  %v534_v53 = vsel %vm527_vm9, %v530_v51, %v533_v49 }
 0x12c   : > { %v326_v55 = vsel %vm315_vm10, nan, %v325_v52  ;;  %v535_v56 = vsel %vm315_vm10, nan, %v534_v53 }
 0x12d   : > { %431 = vst [vmem:[%s134_s30] sm:$0xff] %v326_v55  ;;  %639 = vst [vmem:[%s134_s30 + $0x10] sm:$0xff] %v535_v56 }
 0x12e   : > { %v806_v60 = vpop.eup %805 }
 0x12f   : > { %v808_v61 = vpop.eup %807  ;;  %v427_v62 = vxor.u32 2147483648, %v806_v60 }
 0x130   : > { %v424_v63 = vxor.u32 2147483648, %v808_v61 }
 0x131   : > { %v428_v4 = vsel %vm426_vm11, %v427_v62, %v808_v61  ;;  %v636_v59 = vsel %vm634_vm12, %v427_v62, %v808_v61 }
 0x132   : > { %v425_v0 = vsel %vm423_vm13, %v806_v60, %v424_v63  ;;  %v633_v3 = vsel %vm631_vm14, %v806_v60, %v424_v63 }
 0x133   : > { %v429_v6 = vsel %vm422_vm15, %v425_v0, %v428_v4  ;;  %v637_v8 = vsel %vm630_vm0, %v633_v3, %v636_v59 }
 0x134   : > { %v430_v9 = vsel %vm419_vm1, nan, %v429_v6  ;;  %v638_v10 = vsel %vm419_vm1, nan, %v637_v8 }
 0x135   : > { %432 = vst [vmem:[%s134_s30 + $0x8] sm:$0xff] %v430_v9  ;;  %640 = vst [vmem:[%s134_s30 + $0x18] sm:$0xff] %v638_v10 }
 0x136   : > { %822 = shalt.err (!%p819_p3)
}
 0x137   : > { %s823_s21 = scalar_lea.hbm %s1026_s7, 512  ;;  %s827_s24 = scalar_lea.hbm %s1071_s2, 1024 }
 0x138   : > { %p824_p4 = scmp.ne.s32.totalorder %s1026_s7, %s823_s21  ;;  %p828_p9 = scmp.lt.s32.totalorder %s1026_s7, %s1071_s2 }
 0x139   : > { %p829_p10 = scmp.lt.s32.totalorder %s827_s24, %s823_s21 }
 0x13a   : > { %p825_p7 = pnand %p824_p4, %p932_p5 }
 0x13b   : > { %p830_p11 = por %p829_p10, %p828_p9 }
 0x13c   : > { %p826_p8 = pneg %p825_p7 }
 0x13e   : > { %p831_p12 = pnand %p830_p11, %p826_p8 }
 0x140   : > { %834 = shalt.err (!%p831_p12)
}
 0x141   : > { %754 = dma.vmem_to_hbm [thread:$0]  (%p932_p5), %s1028_s4, 512, %s1026_s7, %s642_s8  }
 0x142 PF: > { %p760_p13 = scmp.ge.s32.totalorder %s869_s12, 2  ;;  %s668_s27 = sand.u32 1, %s857_s9  }
 0x143   : > { %s669_s28 = scalar_lea.sflag [#allocation3], %s668_s27 }
 0x144   : > { %p757_p0 = pnand %p760_p13, %p936_p6 }
 0x146   : > { %p758_p1 = pneg %p757_p0 }
 0x148   : > { %852 = dma.done.wait (%p758_p1), %s669_s28, 512  }
 0x149   : > { %854 = vsyncadd (%p758_p1), %s669_s28, 4294966784  ;;  %p12_p2 = scmp.ge.s32.totalorder %s919_s15, 4   ;;  %s1076_s9 = smov %s861_s10 }
 0x14a   : > { %s1077_s10 = smov %s865_s11  ;;  %s1078_s11 = smov %s930_s18 }
 0x14b   : > { %s1079_s12 = smov %s919_s15  ;;  %14 = sbr.rel (!%p12_p2) target bundleno = 3 (0x3), region = 63 }
 0x150   :  { %674 = vsyncpa [#allocation3], 1 }
 0x151   :  { %676 = vsyncpa [#allocation3 + $0x1], 1 }

</bundles_post_ra>
